<compile_context>
chip_gen: v5e
topology: v5e:2x2
jax: 0.10.0
libtpu: 0.0.40
codegen_flags: <defaults>
</compile_context>

<pallas_src>
import jax
import jax.numpy as jnp
from jax import lax
from jax.experimental import pallas as pl
from jax.experimental.pallas import tpu as pltpu


def _round_up(v, m):
    return ((v + m - 1) // m) * m


def _base_bandwidth(x, y, m, n):
    """Mean off-diagonal entry of the joint (m+n)^2 squared-distance matrix
    (DAN convention: divide by T^2 - T), computed in closed form in
    O((m+n)*D) -- no pairwise matrices, no eye masks.  Works both inside a
    Pallas kernel and in plain JAX.  Returns a (1, 1) f32 array."""
    sx2 = jnp.sum(x * x, keepdims=True)              # (1,1)  sum_i ||x_i||^2
    sy2 = jnp.sum(y * y, keepdims=True)
    colx = jnp.sum(x, axis=0, keepdims=True)         # (1,D)  sum_i x_i
    coly = jnp.sum(y, axis=0, keepdims=True)
    cxx = jnp.sum(colx * colx, keepdims=True)        # (1,1)  ||sum_i x_i||^2
    cyy = jnp.sum(coly * coly, keepdims=True)
    cxy = jnp.sum(colx * coly, keepdims=True)
    sum_dxx = 2.0 * m * sx2 - 2.0 * cxx              # sum_ij ||x_i - x_j||^2
    sum_dyy = 2.0 * n * sy2 - 2.0 * cyy
    sum_dxy = n * sx2 + m * sy2 - 2.0 * cxy          # sum_ij ||x_i - y_j||^2
    t = m + n
    base = (sum_dxx + sum_dyy + 2.0 * sum_dxy) / float(t * t - t)
    # Guard the degenerate all-identical-features case (reference would NaN).
    return jnp.maximum(base, 1e-30)


# ------------------------------- linear MMD -------------------------------- #
def _mmd_linear_kernel(ks_ref, x_ref, y_ref, out_ref):
    f32 = jnp.float32
    x = x_ref[...].astype(f32)                       # (M, D)
    y = y_ref[...].astype(f32)                       # (M, D)
    m = x.shape[0]

    base = _base_bandwidth(x, y, m, y.shape[0])      # (1,1), one pass over x/y

    # Linear-time estimator: only the wrap-around pairs (i, (i+1) % M) are
    # needed.  A sublane rotation gives row i -> row (i+1) % M; the estimator's
    # total is invariant to the rotation direction, so no gathers, iota masks
    # or Gram matrices are required.  O(M*D) VPU + O(K*M) EUP work only.
    x_nxt = pltpu.roll(x, shift=m - 1, axis=0)
    y_nxt = pltpu.roll(y, shift=m - 1, axis=0)
    dx = x - x_nxt
    dy = y - y_nxt
    dxy = x - y_nxt
    dyx = x_nxt - y
    dxx_p = jnp.sum(dx * dx, axis=1, keepdims=True)      # (M,1) ||x_i - x_{i+1}||^2
    dyy_p = jnp.sum(dy * dy, axis=1, keepdims=True)      # (M,1) ||y_i - y_{i+1}||^2
    dxy_p = jnp.sum(dxy * dxy, axis=1, keepdims=True)    # (M,1) zz[i, i+1]
    dyx_p = jnp.sum(dyx * dyx, axis=1, keepdims=True)    # (M,1) zz[i+1, i]

    acc = jnp.zeros((1, 1), f32)
    for k in range(ks_ref.shape[0]):                 # static unroll; K is tiny
        # Per-scale scalar hoisted out of the elementwise/exp work.
        neg_inv = -1.0 / (base * ks_ref[k])          # (1,1)
        acc = acc + jnp.sum(jnp.exp(dxx_p * neg_inv) + jnp.exp(dyy_p * neg_inv)
                            - jnp.exp(dxy_p * neg_inv) - jnp.exp(dyx_p * neg_inv),
                            keepdims=True)
    out_ref[...] = acc / float(m)


def _mmd_linear(x, y, ks):
    m, d = x.shape
    est = (12 * m * d + 4096) * 4 + (1 << 20)        # a handful of (M,D) temporaries
    out = pl.pallas_call(
        _mmd_linear_kernel,
        out_shape=jax.ShapeDtypeStruct((1, 1), jnp.float32),
        in_specs=[
            pl.BlockSpec(memory_space=pltpu.MemorySpace.SMEM),   # kernel_scales
            pl.BlockSpec(memory_space=pltpu.MemorySpace.VMEM),   # x
            pl.BlockSpec(memory_space=pltpu.MemorySpace.VMEM),   # y
        ],
        out_specs=pl.BlockSpec(memory_space=pltpu.MemorySpace.VMEM),
        compiler_params=pltpu.CompilerParams(
            vmem_limit_bytes=int(min(max(est, 4 << 20), 64 << 20))),
    )(ks, x, y)
    return out[0, 0]


# ------------------------------ quadratic MMD ------------------------------ #
def _pair_ksum_kernel(neg_inv_ref, valid_ref, a_ref, b_ref, bsq_ref, out_ref):
    """Partial sum_{i in row block, j, k} exp(-||a_i - b_j||^2 / scale_k) for
    pair s = program_id(0) of (xx, yy, xy).

    Fused distance -> exp -> scalar sum: no kernel/distance matrix is ever
    materialised beyond this (block_rows, P) tile.  Padded rows/columns are
    pushed to a huge distance (SMEM valid table) so exp contributes exactly 0.
    The (1,1) partial is broadcast into a single (8,128) output tile so the
    output stays tile-aligned while every grid step remains independent (both
    grid axes 'parallel' for the v7x megacore); the wrapper reads element
    (s, i*8, 0) of each tile.
    """
    f32 = jnp.float32
    s = pl.program_id(0)
    i = pl.program_id(1)
    a = a_ref[0].astype(f32)                          # (tm, D) row block of pair s
    b = b_ref[0].astype(f32)                          # (P, D)  all columns (resident)
    bsq = bsq_ref[0]                                  # (1, P)  column squared norms
    tm = a.shape[0]
    asq = jnp.sum(a * a, axis=1, keepdims=True)       # (tm, 1) row norms from the input

    # Gram tile on the MXU, contracting the feature axis of both operands
    # (no transposes).  Operands kept in f32 on purpose: this path is
    # EUP(exp)-bound, not MXU-bound, and bf16 would perturb the distances.
    g = lax.dot_general(a, b, (((1,), (1,)), ((), ())),
                        preferred_element_type=f32)              # (tm, P)
    dist = jnp.maximum(asq + bsq - 2.0 * g, 0.0)                 # clamped squared L2

    # Validity mask (handles row padding to the block size and column padding
    # to the common pair width): invalid entries -> huge distance -> exp == 0.
    vr = valid_ref[s, 0]
    vc = valid_ref[s, 1]
    r = lax.broadcasted_iota(jnp.int32, dist.shape, 0) + i * tm
    c = lax.broadcasted_iota(jnp.int32, dist.shape, 1)
    dist = jnp.where((r < vr) & (c < vc), dist, 1e30)

    acc = jnp.zeros((1, 1), f32)
    for k in range(neg_inv_ref.shape[0]):             # static unroll; K is tiny
        acc = acc + jnp.sum(jnp.exp(dist * neg_inv_ref[k]), keepdims=True)
    out_ref[...] = jnp.broadcast_to(acc, out_ref.shape)


def _mmd_quadratic(x, y, ks, *, block_rows):
    m, d = x.shape
    n, _ = y.shape
    num_k = ks.shape[0]

    # Closed-form base bandwidth (cheap O((M+N)*D) scalar prologue), passed in
    # as per-scale -1/bandwidth so the tiled pass over pairs is single-shot.
    base = _base_bandwidth(x, y, m, n)[0, 0]
    neg_inv = -1.0 / (base * ks)                      # (K,)

    # One fused call over the three pairs (xx, yy, xy): pad both inputs to a
    # common row count Pp, stack rows / columns per pair along a leading axis.
    p = max(m, n)
    tm = min(block_rows, _round_up(p, 8))
    pp = _round_up(p, tm)
    xp = jnp.pad(x, ((0, pp - m), (0, 0))) if pp != m else x
    yp = jnp.pad(y, ((0, pp - n), (0, 0))) if pp != n else y
    a_stack = jnp.stack([xp, yp, xp])                 # (3, Pp, D) rows of each pair
    b_stack = jnp.stack([xp, yp, yp])                 # (3, Pp, D) cols of each pair
    bsq = jnp.sum(b_stack * b_stack, axis=2)[:, None, :]          # (3, 1, Pp)
    valid = jnp.array([[m, m], [n, n], [m, n]], dtype=jnp.int32)  # [rows, cols] / pair

    nblk = pp // tm
    # Explicit VMEM budget: double-buffered row block + resident columns +
    # the (tm, Pp) distance/exp working set.  Clamped at 64 MiB (v7x physical).
    est = 4 * (2 * tm * d + 2 * pp * d + 2 * pp + 6 * tm * pp + 2 * 8 * 128) + (2 << 20)
    vmem_bytes = int(min(max(est, 4 << 20), 64 << 20))

    partials = pl.pallas_call(
        _pair_ksum_kernel,
        grid=(3, nblk),
        out_shape=jax.ShapeDtypeStruct((3, nblk * 8, 128), jnp.float32),
        in_specs=[
            pl.BlockSpec(memory_space=pltpu.MemorySpace.SMEM),   # -1/(base*scale_k)
            pl.BlockSpec(memory_space=pltpu.MemorySpace.SMEM),   # valid rows/cols table
            pl.BlockSpec((1, tm, d), lambda s, i: (s, i, 0)),    # row block of pair s
            pl.BlockSpec((1, pp, d), lambda s, i: (s, 0, 0)),    # all cols of pair s
            pl.BlockSpec((1, 1, pp), lambda s, i: (s, 0, 0)),    # col norms of pair s
        ],
        out_specs=pl.BlockSpec((1, 8, 128), lambda s, i: (s, i, 0)),
        compiler_params=pltpu.CompilerParams(
            # Independent per-(pair, block) partials -> megacore-splittable.
            dimension_semantics=("parallel", "parallel"),
            vmem_limit_bytes=vmem_bytes),
    )(neg_inv, valid, a_stack, b_stack, bsq)

    sums = jnp.sum(partials[:, ::8, 0], axis=1)       # (3,) -> s_xx, s_yy, s_xy
    s_xx, s_yy, s_xy = sums[0], sums[1], sums[2]

    # The kxx/kyy diagonals are sum_k exp(-0/scale_k) == K (up to f32 rounding
    # of the zero self-distance), so the unbiased off-diagonal means are
    # recovered analytically instead of with (1 - eye) masks.
    return ((s_xx - num_k * m) / float(m * (m - 1))
            + (s_yy - num_k * n) / float(n * (n - 1))
            - 2.0 * s_xy / float(m * n))


# -------------------------------- public API ------------------------------- #
def mmd_loss(x, y, kernel_scales=1.0, mmd_type="linear", block_rows=256):
    """Pallas TPU MMD loss.  x: (M, D), y: (N, D).  Returns a scalar f32."""
    if mmd_type not in ("linear", "quadratic"):
        raise ValueError("mmd_type must be either linear or quadratic")
    x = jnp.asarray(x, jnp.float32)
    y = jnp.asarray(y, jnp.float32)
    ks = jnp.atleast_1d(jnp.asarray(kernel_scales, jnp.float32))  # (K,)
    if mmd_type == "linear":
        if x.shape[0] != y.shape[0]:
            raise ValueError("linear MMD requires equal batch sizes")
        return _mmd_linear(x, y, ks)
    return _mmd_quadratic(x, y, ks, block_rows=block_rows)


# --------------------------- pure-JAX reference ---------------------------- #
def _mmd_ref(x, y, kernel_scales, mmd_type):
    x = jnp.asarray(x, jnp.float32)
    y = jnp.asarray(y, jnp.float32)

    def sqdist(a, b):
        d = a[:, None, :] - b[None, :, :]
        return jnp.sum(d * d, axis=-1)

    dxx, dyy, dxy = sqdist(x, x), sqdist(y, y), sqdist(x, y)
    m, n = x.shape[0], y.shape[0]
    tot = m + n
    base = (dxx.sum() + dyy.sum() + 2.0 * dxy.sum()) / (tot * tot - tot)
    ks = jnp.atleast_1d(jnp.asarray(kernel_scales, jnp.float32))
    scales = base * ks

    def gk(d):
        return jnp.sum(jnp.exp(-d[None, :, :] / scales[:, None, None]), axis=0)

    kxx, kyy, kxy = gk(dxx), gk(dyy), gk(dxy)
    if mmd_type == "linear":
        i = jnp.arange(m)
        j = (i + 1) % m
        return jnp.mean(kxx[i, j] + kyy[i, j] - kxy[i, j] - kxy[j, i])
    em, en = jnp.eye(m), jnp.eye(n)
    return (jnp.sum(kxx * (1 - em)) / (m * (m - 1))
            + jnp.sum(kyy * (1 - en)) / (n * (n - 1))
            - 2.0 * jnp.sum(kxy) / (m * n))


if __name__ == "__main__":
    key = jax.random.PRNGKey(0)
    kx, ky, kx2, ky2 = jax.random.split(key, 4)
    M, N, D = 8, 8, 32
    x = jax.random.normal(kx, (M, D), dtype=jnp.float32)
    y = jax.random.normal(ky, (N, D), dtype=jnp.float32) + 0.5

    # default module config: kernel_scales=1 (scalar), mmd_type='linear'
    out_lin = jax.block_until_ready(mmd_loss(x, y, 1.0, "linear"))
    out_quad = jax.block_until_ready(mmd_loss(x, y, 1.0, "quadratic"))
    # multi-bandwidth (tensor kernel_scales), quadratic
    ks_vec = jnp.array([0.5, 1.0, 2.0], dtype=jnp.float32)
    out_mk = jax.block_until_ready(mmd_loss(x, y, ks_vec, "quadratic"))
    # unequal / non-8-aligned batches exercise the padded + masked path
    x2 = jax.random.normal(kx2, (12, D), dtype=jnp.float32)
    y2 = jax.random.normal(ky2, (20, D), dtype=jnp.float32) - 0.25
    out_uneq = jax.block_until_ready(mmd_loss(x2, y2, ks_vec, "quadratic"))

    ref_lin = _mmd_ref(x, y, 1.0, "linear")
    ref_quad = _mmd_ref(x, y, 1.0, "quadratic")
    ref_mk = _mmd_ref(x, y, ks_vec, "quadratic")
    ref_uneq = _mmd_ref(x2, y2, ks_vec, "quadratic")

    # Slightly looser than exact-f32: the kernel uses the mathematically
    # identical closed-form bandwidth, which reassociates the big sums.
    def _check(a, b, name):
        assert jnp.allclose(a, b, rtol=2e-3, atol=1e-4), (name, a, b)

    _check(out_lin, ref_lin, "linear")
    _check(out_quad, ref_quad, "quadratic")
    _check(out_mk, ref_mk, "quadratic-multikernel")
    _check(out_uneq, ref_uneq, "quadratic-unequal-batch")

    print("KERNEL_OK")
</pallas_src>

<mosaic_0001>
module attributes {stable_mosaic.version = 11 : i64} {
  func.func @_mmd_linear_kernel(%arg0: memref<1xf32, #tpu.memory_space<smem>>, %arg1: memref<8x32xf32, #tpu.memory_space<vmem>>, %arg2: memref<8x32xf32, #tpu.memory_space<vmem>>, %arg3: memref<1x1xf32, #tpu.memory_space<vmem>>) attributes {dimension_semantics = [], scalar_prefetch = 0 : i64, scratch_operands = 0 : i64, tpu.core_type = #tpu.core_type<tc>} {
    %c0 = arith.constant 0 : index
    %c0_0 = arith.constant 0 : index
    %0 = vector.load %arg1[%c0, %c0_0] : memref<8x32xf32, #tpu.memory_space<vmem>>, vector<8x32xf32>
    %c0_1 = arith.constant 0 : index
    %c0_2 = arith.constant 0 : index
    %1 = vector.load %arg2[%c0_1, %c0_2] : memref<8x32xf32, #tpu.memory_space<vmem>>, vector<8x32xf32>
    %2 = arith.mulf %0, %0 : vector<8x32xf32>
    %3 = vector.shape_cast %2 : vector<8x32xf32> to vector<1x8x32xf32>
    %cst = arith.constant dense<0.000000e+00> : vector<1xf32>
    %4 = vector.multi_reduction <add>, %3, %cst [1, 2] : vector<1x8x32xf32> to vector<1xf32>
    %5 = vector.shape_cast %4 : vector<1xf32> to vector<1x1x1xf32>
    %6 = vector.extract %5[0, 0, 0] : f32 from vector<1x1x1xf32>
    %7 = vector.broadcast %6 : f32 to vector<1x1xf32>
    %8 = arith.mulf %1, %1 : vector<8x32xf32>
    %9 = vector.shape_cast %8 : vector<8x32xf32> to vector<1x8x32xf32>
    %cst_3 = arith.constant dense<0.000000e+00> : vector<1xf32>
    %10 = vector.multi_reduction <add>, %9, %cst_3 [1, 2] : vector<1x8x32xf32> to vector<1xf32>
    %11 = vector.shape_cast %10 : vector<1xf32> to vector<1x1x1xf32>
    %12 = vector.extract %11[0, 0, 0] : f32 from vector<1x1x1xf32>
    %13 = vector.broadcast %12 : f32 to vector<1x1xf32>
    %cst_4 = arith.constant dense<0.000000e+00> : vector<32xf32>
    %14 = vector.multi_reduction <add>, %0, %cst_4 [0] : vector<8x32xf32> to vector<32xf32>
    %15 = vector.shape_cast %14 : vector<32xf32> to vector<1x32xf32>
    %cst_5 = arith.constant dense<0.000000e+00> : vector<32xf32>
    %16 = vector.multi_reduction <add>, %1, %cst_5 [0] : vector<8x32xf32> to vector<32xf32>
    %17 = vector.shape_cast %16 : vector<32xf32> to vector<1x32xf32>
    %18 = arith.mulf %15, %15 : vector<1x32xf32>
    %19 = vector.shape_cast %18 : vector<1x32xf32> to vector<1x1x32xf32>
    %cst_6 = arith.constant dense<0.000000e+00> : vector<1xf32>
    %20 = vector.multi_reduction <add>, %19, %cst_6 [1, 2] : vector<1x1x32xf32> to vector<1xf32>
    %21 = vector.shape_cast %20 : vector<1xf32> to vector<1x1x1xf32>
    %22 = vector.extract %21[0, 0, 0] : f32 from vector<1x1x1xf32>
    %23 = vector.broadcast %22 : f32 to vector<1x1xf32>
    %24 = arith.mulf %17, %17 : vector<1x32xf32>
    %25 = vector.shape_cast %24 : vector<1x32xf32> to vector<1x1x32xf32>
    %cst_7 = arith.constant dense<0.000000e+00> : vector<1xf32>
    %26 = vector.multi_reduction <add>, %25, %cst_7 [1, 2] : vector<1x1x32xf32> to vector<1xf32>
    %27 = vector.shape_cast %26 : vector<1xf32> to vector<1x1x1xf32>
    %28 = vector.extract %27[0, 0, 0] : f32 from vector<1x1x1xf32>
    %29 = vector.broadcast %28 : f32 to vector<1x1xf32>
    %30 = arith.mulf %15, %17 : vector<1x32xf32>
    %31 = vector.shape_cast %30 : vector<1x32xf32> to vector<1x1x32xf32>
    %cst_8 = arith.constant dense<0.000000e+00> : vector<1xf32>
    %32 = vector.multi_reduction <add>, %31, %cst_8 [1, 2] : vector<1x1x32xf32> to vector<1xf32>
    %33 = vector.shape_cast %32 : vector<1xf32> to vector<1x1x1xf32>
    %34 = vector.extract %33[0, 0, 0] : f32 from vector<1x1x1xf32>
    %35 = vector.broadcast %34 : f32 to vector<1x1xf32>
    %cst_9 = arith.constant 1.600000e+01 : f32
    %36 = vector.broadcast %cst_9 : f32 to vector<1x1xf32>
    %37 = arith.mulf %36, %7 : vector<1x1xf32>
    %cst_10 = arith.constant 2.000000e+00 : f32
    %38 = vector.broadcast %cst_10 : f32 to vector<1x1xf32>
    %39 = arith.mulf %38, %23 : vector<1x1xf32>
    %40 = arith.subf %37, %39 : vector<1x1xf32>
    %cst_11 = arith.constant 1.600000e+01 : f32
    %41 = vector.broadcast %cst_11 : f32 to vector<1x1xf32>
    %42 = arith.mulf %41, %13 : vector<1x1xf32>
    %cst_12 = arith.constant 2.000000e+00 : f32
    %43 = vector.broadcast %cst_12 : f32 to vector<1x1xf32>
    %44 = arith.mulf %43, %29 : vector<1x1xf32>
    %45 = arith.subf %42, %44 : vector<1x1xf32>
    %cst_13 = arith.constant 8.000000e+00 : f32
    %46 = vector.broadcast %cst_13 : f32 to vector<1x1xf32>
    %47 = arith.mulf %46, %7 : vector<1x1xf32>
    %cst_14 = arith.constant 8.000000e+00 : f32
    %48 = vector.broadcast %cst_14 : f32 to vector<1x1xf32>
    %49 = arith.mulf %48, %13 : vector<1x1xf32>
    %50 = arith.addf %47, %49 : vector<1x1xf32>
    %cst_15 = arith.constant 2.000000e+00 : f32
    %51 = vector.broadcast %cst_15 : f32 to vector<1x1xf32>
    %52 = arith.mulf %51, %35 : vector<1x1xf32>
    %53 = arith.subf %50, %52 : vector<1x1xf32>
    %54 = arith.addf %40, %45 : vector<1x1xf32>
    %cst_16 = arith.constant 2.000000e+00 : f32
    %55 = vector.broadcast %cst_16 : f32 to vector<1x1xf32>
    %56 = arith.mulf %55, %53 : vector<1x1xf32>
    %57 = arith.addf %54, %56 : vector<1x1xf32>
    %cst_17 = arith.constant 2.400000e+02 : f32
    %58 = vector.broadcast %cst_17 : f32 to vector<1x1xf32>
    %59 = arith.divf %57, %58 : vector<1x1xf32>
    %cst_18 = arith.constant 1.000000e-30 : f32
    %60 = vector.broadcast %cst_18 : f32 to vector<1x1xf32>
    %61 = arith.maximumf %59, %60 : vector<1x1xf32>
    %c7_i32 = arith.constant 7 : i32
    %62 = tpu.dynamic_rotate %0 by %c7_i32 dim 0 : vector<8x32xf32>, i32 -> vector<8x32xf32>
    %c7_i32_19 = arith.constant 7 : i32
    %63 = tpu.dynamic_rotate %1 by %c7_i32_19 dim 0 : vector<8x32xf32>, i32 -> vector<8x32xf32>
    %64 = arith.subf %0, %62 : vector<8x32xf32>
    %65 = arith.subf %1, %63 : vector<8x32xf32>
    %66 = arith.subf %0, %63 : vector<8x32xf32>
    %67 = arith.subf %62, %1 : vector<8x32xf32>
    %68 = arith.mulf %64, %64 : vector<8x32xf32>
    %cst_20 = arith.constant dense<0.000000e+00> : vector<8xf32>
    %69 = vector.multi_reduction <add>, %68, %cst_20 [1] : vector<8x32xf32> to vector<8xf32>
    %70 = vector.shape_cast %69 : vector<8xf32> to vector<8x1xf32>
    %71 = arith.mulf %65, %65 : vector<8x32xf32>
    %cst_21 = arith.constant dense<0.000000e+00> : vector<8xf32>
    %72 = vector.multi_reduction <add>, %71, %cst_21 [1] : vector<8x32xf32> to vector<8xf32>
    %73 = vector.shape_cast %72 : vector<8xf32> to vector<8x1xf32>
    %74 = arith.mulf %66, %66 : vector<8x32xf32>
    %cst_22 = arith.constant dense<0.000000e+00> : vector<8xf32>
    %75 = vector.multi_reduction <add>, %74, %cst_22 [1] : vector<8x32xf32> to vector<8xf32>
    %76 = vector.shape_cast %75 : vector<8xf32> to vector<8x1xf32>
    %77 = arith.mulf %67, %67 : vector<8x32xf32>
    %cst_23 = arith.constant dense<0.000000e+00> : vector<8xf32>
    %78 = vector.multi_reduction <add>, %77, %cst_23 [1] : vector<8x32xf32> to vector<8xf32>
    %79 = vector.shape_cast %78 : vector<8xf32> to vector<8x1xf32>
    %cst_24 = arith.constant 0.000000e+00 : f32
    %80 = vector.broadcast %cst_24 : f32 to vector<1x1xf32>
    %c0_25 = arith.constant 0 : index
    %81 = memref.load %arg0[%c0_25] : memref<1xf32, #tpu.memory_space<smem>>
    %82 = vector.broadcast %81 : f32 to vector<1x1xf32>
    %83 = arith.mulf %61, %82 : vector<1x1xf32>
    %cst_26 = arith.constant -1.000000e+00 : f32
    %84 = vector.broadcast %cst_26 : f32 to vector<1x1xf32>
    %85 = arith.divf %84, %83 : vector<1x1xf32>
    %86 = vector.broadcast %85 : vector<1x1xf32> to vector<8x1xf32>
    %87 = arith.mulf %70, %86 : vector<8x1xf32>
    %88 = math.exp %87 : vector<8x1xf32>
    %89 = vector.broadcast %85 : vector<1x1xf32> to vector<8x1xf32>
    %90 = arith.mulf %73, %89 : vector<8x1xf32>
    %91 = math.exp %90 : vector<8x1xf32>
    %92 = arith.addf %88, %91 : vector<8x1xf32>
    %93 = vector.broadcast %85 : vector<1x1xf32> to vector<8x1xf32>
    %94 = arith.mulf %76, %93 : vector<8x1xf32>
    %95 = math.exp %94 : vector<8x1xf32>
    %96 = arith.subf %92, %95 : vector<8x1xf32>
    %97 = vector.broadcast %85 : vector<1x1xf32> to vector<8x1xf32>
    %98 = arith.mulf %79, %97 : vector<8x1xf32>
    %99 = math.exp %98 : vector<8x1xf32>
    %100 = arith.subf %96, %99 : vector<8x1xf32>
    %101 = vector.shape_cast %100 : vector<8x1xf32> to vector<1x8x1xf32>
    %cst_27 = arith.constant dense<0.000000e+00> : vector<1xf32>
    %102 = vector.multi_reduction <add>, %101, %cst_27 [1, 2] : vector<1x8x1xf32> to vector<1xf32>
    %103 = vector.shape_cast %102 : vector<1xf32> to vector<1x1x1xf32>
    %104 = vector.extract %103[0, 0, 0] : f32 from vector<1x1x1xf32>
    %105 = vector.broadcast %104 : f32 to vector<1x1xf32>
    %106 = arith.addf %80, %105 : vector<1x1xf32>
    %cst_28 = arith.constant 8.000000e+00 : f32
    %107 = vector.broadcast %cst_28 : f32 to vector<1x1xf32>
    %108 = arith.divf %106, %107 : vector<1x1xf32>
    %c0_29 = arith.constant 0 : index
    %c0_30 = arith.constant 0 : index
    %109 = vector.load %arg3[%c0_29, %c0_30] : memref<1x1xf32, #tpu.memory_space<vmem>>, vector<1x1xf32>
    tpu.vector_store %arg3[%c0_29, %c0_30], %108 {strides = array<i32>} : memref<1x1xf32, #tpu.memory_space<vmem>>, vector<1x1xf32>,
    return
  }
}

</mosaic_0001>

<bundles_post_ra>
// kernel: tpu_custom_call.1
= control target key start
LH: loop header
LB: loop body
LE: loop exit
PB: predicated region body
PF: predicated region fallthrough
CT: control target
= control target key end

     0   :  { %9 = vsyncpa [#allocation4], 0  ;;  %s395_s0 = inlined_call_operand.<no memory space> [shape: f32[1], index: 0, kind: input, shape index: {}]   ;;  %s396_s1 = inlined_call_operand.hbm [shape: f32[8,32], index: 1, kind: input, shape index: {}]   ;;  %s397_s2 = inlined_call_operand.hbm [shape: f32[8,32], index: 2, kind: input, shape index: {}]   ;;  %s398_s3 = inlined_call_operand.hbm [shape: f32[1,1], index: 3, kind: output, shape index: {}]  }
   0x1   :  { %10 = vsyncpa [#allocation7], 0 }
   0x2   :  { %11 = vsyncpa [#allocation5], 0  ;;  %s19_s14 = sshll.u32 %s396_s1, 4  ;;  %s350_s15 = smov [#allocation3]   ;;  %s20_s14 = int_to_ptr.hbm [resolvable:$true] %s19_s14 }
   0x3   :  { %s21_s16 = sshll.u32 %s350_s15, 4  ;;  %s30_s19 = sshll.u32 %s397_s2, 4  ;;  %s22_s16 = int_to_ptr.vmem [resolvable:$true] %s21_s16  ;;  %s31_s19 = int_to_ptr.hbm [resolvable:$true] %s30_s19 }
   0x4   :  { %24 = dma.hbm_to_vmem [thread:$0]  %s20_s14, 128, %s22_s16, [#allocation4]  }
   0x5   :  { %s351_s20 = smov [#allocation6]  }
   0x6   :  { %s32_s21 = sshll.u32 %s351_s20, 4  ;;  %s33_s21 = int_to_ptr.vmem [resolvable:$true] %s32_s21 }
   0x7   :  { %35 = dma.hbm_to_vmem [thread:$0]  %s31_s19, 128, %s33_s21, [#allocation7]  }
   0x8   :  { %344 = dma.done.wait [#allocation4], 128  }
   0x9   :  { %345 = vsyncadd [#allocation4], 4294967168 }
   0xa   :  { %346 = dma.done.wait [#allocation7], 128  }
   0xb   :  { %347 = vsyncadd [#allocation7], 4294967168  ;;  %vm47_vm0 = vcmask 261120   ;;  %v44_v0 = vld [vmem:[#allocation3] sm:$0xff]  ;;  %v45_v1 = vld [vmem:[#allocation6] sm:$0xff]  ;;  %vm86_vm1 = vcmask 253952  }
   0xc   :  { %v46_v2 = vmul.f32 %v44_v0, %v44_v0  ;;  %v71_v3 = vsel %vm47_vm0, %v44_v0, 0.0  ;;  %v78_v4 = vsel %vm47_vm0, %v45_v1, 0.0  ;;  %v59_v10 = vmul.f32 %v45_v1, %v45_v1  ;;  %s230_s30 = sshll.u32 %s398_s3, 4  ;;  %s231_s30 = int_to_ptr.hbm [resolvable:$true] %s230_s30 }
   0xd   :  { %v72_v5 = vrot.slane %v71_v3, 4  ;;  %v79_v6 = vrot.slane %v78_v4, 4  ;;  %v145_v18 = vrot.slane %v44_v0, 1  ;;  %v146_v30 = vrot.slane %v45_v1, 1 }
   0xe   :  { %v48_v7 = vsel %vm47_vm0, %v46_v2, 0.0  ;;  %v60_v15 = vsel %vm47_vm0, %v59_v10, 0.0  ;;  %vm200_vm7 = vcmask 7168   ;;  %vm221_vm9 = vcmask 0  }
   0xf   :  { %49 = vadd.xlane.f32.xlu0 %v48_v7  ;;  %v73_v8 = vadd.f32 %v72_v5, %v71_v3  ;;  %v80_v9 = vadd.f32 %v79_v6, %v78_v4  ;;  %v147_v23 = vsub.f32 %v44_v0, %v145_v18  ;;  %v150_v31 = vsub.f32 %v145_v18, %v45_v1 }
  0x10   :  { %v149_v32 = vsub.f32 %v44_v0, %v146_v30  ;;  %v148_v33 = vsub.f32 %v45_v1, %v146_v30 }
  0x11   :  { %v74_v11 = vrot.slane %v73_v8, 2  ;;  %v81_v12 = vrot.slane %v80_v9, 2  ;;  %v151_v27 = vmul.f32 %v147_v23, %v147_v23  ;;  %v163_v34 = vmul.f32 %v150_v31, %v150_v31 }
  0x12   :  { %v159_v35 = vmul.f32 %v149_v32, %v149_v32  ;;  %v155_v36 = vmul.f32 %v148_v33, %v148_v33 }
  0x13   :  { %v75_v13 = vadd.f32 %v74_v11, %v73_v8  ;;  %v82_v14 = vadd.f32 %v81_v12, %v80_v9  ;;  %v152_v29 = vsel %vm47_vm0, %v151_v27, 0.0  ;;  %v164_v37 = vsel %vm47_vm0, %v163_v34, 0.0 }
  0x14   :  { %v160_v38 = vsel %vm47_vm0, %v159_v35, 0.0  ;;  %v156_v39 = vsel %vm47_vm0, %v155_v36, 0.0  ;;  %v352_v11 = vmov 240.0  }
  0x15   :  { %v76_v16 = vrot.slane %v75_v13, 1  ;;  %v83_v17 = vrot.slane %v82_v14, 1  ;;  %258 = vrcp.f32 %v352_v11 }
  0x17   :  { %61 = vadd.xlane.f32.xlu0 %v60_v15  ;;  %v77_v19 = vadd.f32 %v76_v16, %v75_v13  ;;  %v84_v20 = vadd.f32 %v83_v17, %v82_v14 }
  0x19   :  { %v85_v21 = vmul.f32 %v77_v19, %v77_v19  ;;  %v110_v22 = vmul.f32 %v84_v20, %v77_v19  ;;  %v98_v26 = vmul.f32 %v84_v20, %v84_v20 }
  0x1b   :  { %v87_v24 = vsel %vm86_vm1, %v85_v21, 0.0  ;;  %v111_v25 = vsel %vm86_vm1, %v110_v22, 0.0  ;;  %v99_v28 = vsel %vm86_vm1, %v98_v26, 0.0  ;;  %v259_v12 = vpop.eup %258 }
  0x1c   :  { %88 = vadd.xlane.f32.xlu1 %v87_v24  ;;  %112 = vadd.xlane.f32.xlu2 %v111_v25  ;;  %v137_v13 = vmul.f32 240.0, %v259_v12  ;;  %vm141_vm2 = vweird.f32 %v259_v12 }
  0x1e   :  { %v138_v15 = vsub.f32 1.0, %v137_v13 }
  0x1f   :  { %157 = vadd.xlane.f32.xlu0 %v156_v39 }
  0x20   :  { %v139_v20 = vmul.f32 %v259_v12, %v138_v15  ;;  %v353_v15 = vmov 8.0  }
  0x22   :  { %v140_v31 = vadd.f32 %v259_v12, %v139_v20 }
  0x24   :  { %100 = vadd.xlane.f32.xlu1 %v99_v28  ;;  %153 = vadd.xlane.f32.xlu2 %v152_v29  ;;  %v142_v35 = vsel %vm141_vm2, %v259_v12, %v140_v31 }
  0x2c   :  { %165 = vadd.xlane.f32.xlu2 %v164_v37  ;;  %161 = vadd.xlane.f32.xlu1 %v160_v38  ;;  %v168_v38 = vstv %s395_s0  ;;  %s354_s0 = smov [#allocation8]  }
  0x2d   :  { %s228_s27 = sshll.u32 %s354_s0, 4  ;;  %s229_s27 = int_to_ptr.vmem [resolvable:$true] %s228_s27 }
  0x82   :  { %v50_v40 = vpop.xlane.xlu0 %49 }
  0x83   :  { %v51_v41 = vrot.slane %v50_v40, 4 }
  0x85   :  { %v52_v42 = vadd.f32 %v51_v41, %v50_v40 }
  0x87   :  { %v53_v43 = vrot.slane %v52_v42, 2 }
  0x89   :  { %v54_v44 = vadd.f32 %v53_v43, %v52_v42 }
  0x8a   :  { %v62_v45 = vpop.xlane.xlu0 %61 }
  0x8b   :  { %v63_v46 = vrot.slane %v62_v45, 4  ;;  %v55_v47 = vrot.slane %v54_v44, 1 }
  0x8d   :  { %v64_v48 = vadd.f32 %v63_v46, %v62_v45  ;;  %v56_v49 = vadd.f32 %v55_v47, %v54_v44 }
  0x8f   :  { %v65_v50 = vrot.slane %v64_v48, 2  ;;  %v89_v51 = vpop.xlane.xlu1 %88  ;;  %v113_v52 = vpop.xlane.xlu2 %112  ;;  %241 = vpush %v56_v49 }
  0x90   :  { %v90_v53 = vrot.slane %v89_v51, 4  ;;  %v114_v54 = vrot.slane %v113_v52, 4 }
  0x91   :  { %v66_v55 = vadd.f32 %v65_v50, %v64_v48 }
  0x92   :  { %v91_v56 = vadd.f32 %v90_v53, %v89_v51  ;;  %v115_v57 = vadd.f32 %v114_v54, %v113_v52  ;;  %v158_v52 = vpop.xlane.xlu0 %157 }
  0x93   :  { %v67_v58 = vrot.slane %v66_v55, 1 }
  0x94   :  { %v92_v59 = vrot.slane %v91_v56, 2  ;;  %v116_v62 = vrot.slane %v115_v57, 2 }
  0x95   :  { %v68_v60 = vadd.f32 %v67_v58, %v66_v55 }
  0x96   :  { %v93_v61 = vadd.f32 %v92_v59, %v91_v56  ;;  %v117_v4 = vadd.f32 %v116_v62, %v115_v57 }
  0x97   :  { %v101_v63 = vpop.xlane.xlu1 %100  ;;  %243 = vpush %v68_v60  ;;  %v154_v43 = vpop.xlane.xlu2 %153 }
  0x98   :  { %v102_v0 = vrot.slane %v101_v63, 4  ;;  %v94_v1 = vrot.slane %v93_v61, 1  ;;  %v118_v7 = vrot.slane %v117_v4, 1 }
  0x9a   :  { %v103_v2 = vadd.f32 %v102_v0, %v101_v63  ;;  %v95_v3 = vadd.f32 %v94_v1, %v93_v61  ;;  %v119_v10 = vadd.f32 %v118_v7, %v117_v4 }
  0x9c   :  { %v104_v5 = vrot.slane %v103_v2, 2  ;;  %245 = vpush %v95_v3 }
  0x9e   :  { %v105_v6 = vadd.f32 %v104_v5, %v103_v2 }
  0x9f   :  { %v162_v54 = vpop.xlane.xlu1 %161  ;;  %v166_v56 = vpop.xlane.xlu2 %165 }
  0xa0   :  { %v106_v8 = vrot.slane %v105_v6, 1 }
  0xa2   :  { %v107_v9 = vadd.f32 %v106_v8, %v105_v6 }
  0xa4   :  { %247 = vpush %v107_v9 }
  0xa5   :  { %249 = vpush %v119_v10 }
  0xc0   :  { %s242_s1 = spop %241 }
  0xc1   :  { %v58_v17 = vstv %s242_s1 }
  0xc2   :  { %v128_v21 = vmul.f32 8.0, %v58_v17  ;;  %v122_v23 = vmul.f32 16.0, %v58_v17 }
  0xc8   :  { %s244_s2 = spop %243 }
  0xc9   :  { %v70_v14 = vstv %s244_s2 }
  0xca   :  { %v129_v18 = vmul.f32 8.0, %v70_v14  ;;  %v125_v24 = vmul.f32 16.0, %v70_v14 }
  0xcc   :  { %v130_v27 = vadd.f32 %v129_v18, %v128_v21 }
  0xcd   :  { %s246_s22 = spop %245 }
  0xce   :  { %v97_v16 = vstv %s246_s22 }
  0xcf   :  { %v123_v19 = vmul.f32 2.0, %v97_v16 }
  0xd1   :  { %v124_v29 = vsub.f32 %v122_v23, %v123_v19 }
  0xd5   :  { %s248_s23 = spop %247 }
  0xd6   :  { %v109_v22 = vstv %s248_s23  ;;  %s250_s24 = spop %249 }
  0xd7   :  { %v126_v25 = vmul.f32 2.0, %v109_v22  ;;  %v121_v26 = vstv %s250_s24 }
  0xd8   :  { %v131_v28 = vmul.f32 2.0, %v121_v26 }
  0xd9   :  { %v127_v30 = vsub.f32 %v125_v24, %v126_v25 }
  0xda   :  { %v132_v32 = vsub.f32 %v130_v27, %v131_v28 }
  0xdb   :  { %v133_v33 = vadd.f32 %v127_v30, %v124_v29 }
  0xdc   :  { %v134_v34 = vmul.f32 2.0, %v132_v32 }
  0xde   :  { %v135_v36 = vadd.f32 %v134_v34, %v133_v33 }
  0xe0   :  { %v143_v37 = vmul.f32 %v142_v35, %v135_v36 }
  0xe2   :  { %v144_v39 = vmax.f32 %v143_v37, 1e-30 }
  0xe4   :  { %v169_v40 = vmul.f32 %v168_v38, %v144_v39 }
  0xe6   :  { %260 = vrcp.f32 %v169_v40  ;;  %v181_v45 = vand.u32 2147483648, %v169_v40  ;;  %v179_v47 = vand.u32 2147483647, %v169_v40  ;;  %vm175_vm4 = vweird.f32 %v169_v40 }
  0xe8   :  { %v182_v49 = vor.u32 1.1754944e-38, %v181_v45  ;;  %vm180_vm6 = vcmp.eq.f32.partialorder %v179_v47, 8.507059e+37 }
  0xec   :  { %v261_v41 = vpop.eup %260 }
  0xed   :  { %v171_v42 = vmul.f32 %v261_v41, %v169_v40  ;;  %vm176_vm3 = vweird.f32 %v261_v41 }
  0xee   :  { %vm177_vm5 = vmor %vm175_vm4, %vm176_vm3 }
  0xef   :  { %v172_v44 = vsub.f32 1.0, %v171_v42 }
  0xf1   :  { %v173_v46 = vmul.f32 %v261_v41, %v172_v44 }
  0xf3   :  { %v174_v48 = vadd.f32 %v261_v41, %v173_v46 }
  0xf5   :  { %v178_v50 = vsel %vm177_vm5, %v261_v41, %v174_v48 }
  0xf6   :  { %v183_v51 = vsel %vm180_vm6, %v182_v49, %v178_v50 }
  0xf7   :  { %v184_v53 = vmul.f32 -1.0, %v183_v51 }
  0xf9   :  { %v185_v55 = vmul.f32 %v184_v53, %v154_v43  ;;  %v188_v57 = vmul.f32 %v184_v53, %v158_v52  ;;  %v192_v58 = vmul.f32 %v184_v53, %v162_v54  ;;  %v196_v60 = vmul.f32 %v184_v53, %v166_v56 }
  0xfb   :  { %v186_v59 = vmul.f32 1.442695, %v185_v55  ;;  %v189_v61 = vmul.f32 1.442695, %v188_v57  ;;  %v193_v62 = vmul.f32 1.442695, %v192_v58 }
  0xfc   :  { %v197_v63 = vmul.f32 1.442695, %v196_v60 }
  0xfd   :  { %262 = vpow2.f32 %v186_v59 }
  0xfe   :  { %264 = vpow2.f32 %v189_v61 }
  0xff   :  { %266 = vpow2.f32 %v193_v62 }
 0x100   :  { %268 = vpow2.f32 %v197_v63 }
 0x101   :  { %270 = vrcp.f32 %v353_v15 }
 0x103   :  { %v263_v0 = vpop.eup %262 }
 0x104   :  { %v265_v1 = vpop.eup %264 }
 0x105   :  { %v191_v2 = vadd.f32 %v265_v1, %v263_v0  ;;  %v267_v3 = vpop.eup %266 }
 0x106   :  { %v269_v5 = vpop.eup %268 }
 0x107   :  { %v195_v4 = vsub.f32 %v191_v2, %v267_v3  ;;  %v271_v16 = vpop.eup %270 }
 0x108   :  { %v214_v17 = vmul.f32 8.0, %v271_v16  ;;  %vm218_vm8 = vweird.f32 %v271_v16 }
 0x109   :  { %v199_v6 = vsub.f32 %v195_v4, %v269_v5 }
 0x10a   :  { %v215_v18 = vsub.f32 1.0, %v214_v17 }
 0x10b   :  { %v201_v7 = vsel %vm200_vm7, %v199_v6, 0.0 }
 0x10c   :  { %202 = vadd.xlane.f32.xlu0 %v201_v7  ;;  %v216_v19 = vmul.f32 %v271_v16, %v215_v18 }
 0x10e   :  { %v217_v20 = vadd.f32 %v271_v16, %v216_v19 }
 0x110   :  { %v219_v21 = vsel %vm218_vm8, %v271_v16, %v217_v20 }
 0x17f   :  { %v203_v8 = vpop.xlane.xlu0 %202 }
 0x180   :  { %v204_v9 = vrot.slane %v203_v8, 4 }
 0x182   :  { %v205_v10 = vadd.f32 %v204_v9, %v203_v8 }
 0x184   :  { %v206_v11 = vrot.slane %v205_v10, 2 }
 0x186   :  { %v207_v12 = vadd.f32 %v206_v11, %v205_v10 }
 0x188   :  { %v208_v13 = vrot.slane %v207_v12, 1 }
 0x18a   :  { %v209_v14 = vadd.f32 %v208_v13, %v207_v12 }
 0x18c   :  { %251 = vpush %v209_v14 }
 0x1bd   :  { %s252_s4 = spop %251 }
 0x1be   :  { %v211_v22 = vstv %s252_s4 }
 0x1bf   :  { %v220_v23 = vmul.f32 %v219_v21, %v211_v22 }
 0x1c1   :  { %222 = vst.msk [vmem:[#allocation8] sm:$0x1] %vm221_vm9, %v220_v23 }
 0x1c2   :  { %233 = dma.vmem_to_hbm [thread:$0]  %s229_s27, 16, %s231_s30, [#allocation5]  }
 0x1c3   :  { %348 = dma.done.wait [#allocation5], 16  }
 0x1c4   :  { %349 = vsyncadd [#allocation5], 4294967280 }
 0x1c5   :  { %238 = vsyncpa [#allocation4], 1 }
 0x1c6   :  { %239 = vsyncpa [#allocation7], 1 }
 0x1c7   :  { %240 = vsyncpa [#allocation5], 1 }

</bundles_post_ra>
